<compile_context>
chip_gen: v7x
topology: tpu7x:2x2x1
jax: 0.10.0
libtpu: 0.0.40
codegen_flags: <defaults>
</compile_context>

<pallas_src>
import functools

import jax
import jax.numpy as jnp
from jax.experimental import pallas as pl
from jax.experimental.pallas import tpu as pltpu


def _round_up(x: int, m: int) -> int:
    return ((x + m - 1) // m) * m


# ----------------------------------------------------------------------------
# Pallas kernel: full lobe (all layers), optional stacked slab and/or fused
# hedge weighted sum, per batch tile.
# ----------------------------------------------------------------------------
def _make_hedge_lobe_kernel(n_layers: int, output_softmax: bool, compute_dtype,
                            want_per_layer: bool, want_combined: bool):
    def kernel(lw_ref, x_ref, *refs):
        # refs = [(wh, bh, wo, bo) * n_layers, <slab_out?>, <combined_out?>]
        param_refs = refs[: 4 * n_layers]
        out_refs = list(refs[4 * n_layers:])
        slab_ref = out_refs.pop(0) if want_per_layer else None   # (tile_b, L*O)
        comb_ref = out_refs.pop(0) if want_combined else None    # (tile_b, O)

        h = x_ref[...].astype(jnp.float32)
        outs = []
        acc = None

        for l in range(n_layers):
            wh_ref, bh_ref, wo_ref, bo_ref = param_refs[4 * l: 4 * l + 4]

            # Hidden layer l: Linear on the MXU (bf16 inputs, f32 accumulation).
            h = (
                jnp.dot(h.astype(compute_dtype), wh_ref[...],
                        preferred_element_type=jnp.float32)
                + bh_ref[...]
            )
            # ELU(alpha=1) in f32; clamp before exp to avoid inf on the dead branch.
            h = jnp.where(h > 0.0, h, jnp.exp(jnp.minimum(h, 0.0)) - 1.0)

            # Per-layer output head.
            o = (
                jnp.dot(h.astype(compute_dtype), wo_ref[...],
                        preferred_element_type=jnp.float32)
                + bo_ref[...]
            )
            if output_softmax:
                o = o - jnp.max(o, axis=-1, keepdims=True)
                e = jnp.exp(o)
                o = e * pl.reciprocal(jnp.sum(e, axis=-1, keepdims=True),
                                      approx=True)

            if want_per_layer:
                outs.append(o)
            if want_combined:
                # Fused hedge weighted combination; layer weight is an SMEM scalar.
                term = lw_ref[l] * o
                acc = term if acc is None else acc + term

        if want_per_layer:
            # Single lane-dense store of all layer heads for this batch tile.
            slab_ref[...] = jnp.concatenate(outs, axis=-1).astype(slab_ref.dtype)
        if want_combined:
            comb_ref[...] = acc.astype(comb_ref.dtype)

    return kernel


# ----------------------------------------------------------------------------
# Wrapper: one pallas_call, batch-tiled grid, weights resident in VMEM.
# ----------------------------------------------------------------------------
def hedge_lobe_pallas(x, params, layer_weights, *, output_softmax: bool,
                      want_per_layer: bool = True, want_combined: bool = True,
                      compute_dtype=jnp.bfloat16, max_tile_b: int = 512):
    assert want_per_layer or want_combined
    n_layers = len(params)
    batch, input_dim = x.shape
    hidden = params[0]["wh"].shape[1]
    output_dim = params[0]["wo"].shape[1]

    # Batch tiling (multiple of 8 sublanes); pad batch to a whole number of tiles.
    tile_b = min(max_tile_b, _round_up(batch, 8))
    padded = _round_up(batch, tile_b)
    if padded != batch:
        x = jnp.pad(x, ((0, padded - batch), (0, 0)))
    grid = (padded // tile_b,)

    # Weights in bf16 for the MXU; biases stay f32.
    flat_params = []
    for p in params:
        flat_params += [
            p["wh"].astype(compute_dtype),
            p["bh"].astype(jnp.float32),
            p["wo"].astype(compute_dtype),
            p["bo"].astype(jnp.float32),
        ]
    lw = layer_weights.astype(jnp.float32)

    def const_spec(shape):
        # Whole array, same block for every grid step -> stays VMEM-resident.
        return pl.BlockSpec(shape, lambda b: (0,) * len(shape))

    in_specs = [pl.BlockSpec(memory_space=pltpu.MemorySpace.SMEM)]  # layer_weights
    in_specs.append(pl.BlockSpec((tile_b, input_dim), lambda b: (b, 0)))  # x (streamed)
    for w in flat_params:
        in_specs.append(const_spec(w.shape))

    out_shape, out_specs = [], []
    if want_per_layer:
        # Lane-dense slab: all per-layer heads concatenated along the last axis.
        out_shape.append(
            jax.ShapeDtypeStruct((padded, n_layers * output_dim), jnp.float32))
        out_specs.append(
            pl.BlockSpec((tile_b, n_layers * output_dim), lambda b: (b, 0)))
    if want_combined:
        out_shape.append(jax.ShapeDtypeStruct((padded, output_dim), jnp.float32))
        out_specs.append(pl.BlockSpec((tile_b, output_dim), lambda b: (b, 0)))

    # VMEM budget: resident params (+double buffers) + streamed input/output tiles.
    def nbytes(a):
        return int(a.size) * a.dtype.itemsize

    resident = sum(nbytes(w) for w in flat_params)
    out_cols = (n_layers * output_dim if want_per_layer else 0) + \
               (output_dim if want_combined else 0)
    streamed = tile_b * (input_dim + out_cols) * 4
    vmem_limit = int(min(64 << 20,
                         max(16 << 20, 2 * (resident + streamed) + (2 << 20))))

    flops = 2 * padded * (input_dim * hidden
                          + (n_layers - 1) * hidden * hidden
                          + n_layers * hidden * output_dim)
    transcendentals = padded * n_layers * (hidden
                                           + (output_dim + 1 if output_softmax else 0))
    bytes_accessed = padded * input_dim * 4 + resident + padded * out_cols * 4

    kernel = _make_hedge_lobe_kernel(n_layers, output_softmax, compute_dtype,
                                     want_per_layer, want_combined)
    outs = pl.pallas_call(
        kernel,
        grid=grid,
        in_specs=in_specs,
        out_specs=out_specs,
        out_shape=out_shape,
        compiler_params=pltpu.CompilerParams(
            dimension_semantics=("parallel",),
            vmem_limit_bytes=vmem_limit,
        ),
        cost_estimate=pl.CostEstimate(
            flops=int(flops),
            transcendentals=int(transcendentals),
            bytes_accessed=int(bytes_accessed),
        ),
    )(lw, x, *flat_params)

    outs = list(outs) if isinstance(outs, (tuple, list)) else [outs]
    slab = outs.pop(0)[:batch] if want_per_layer else None
    combined = outs.pop(0)[:batch] if want_combined else None
    return slab, combined


# ----------------------------------------------------------------------------
# HedgeVAMPNetModel forward / transform.
# ----------------------------------------------------------------------------
def init_hedge_vampnet_params(key, input_dim, output_dim, n_hidden_layers,
                              hidden_layer_width):
    """Deterministic init matching the PyTorch module's parameter shapes."""
    params = []
    in_dim = input_dim
    for _ in range(n_hidden_layers):
        key, k1, k2, k3, k4 = jax.random.split(key, 5)
        bound_h = 1.0 / jnp.sqrt(in_dim)
        bound_o = 1.0 / jnp.sqrt(hidden_layer_width)
        params.append({
            # weights stored (in, out) so forward is x @ W + b
            "wh": jax.random.uniform(k1, (in_dim, hidden_layer_width), jnp.float32,
                                     -bound_h, bound_h),
            "bh": jax.random.uniform(k2, (1, hidden_layer_width), jnp.float32,
                                     -bound_h, bound_h),
            "wo": jax.random.uniform(k3, (hidden_layer_width, output_dim), jnp.float32,
                                     -bound_o, bound_o),
            "bo": jax.random.uniform(k4, (1, output_dim), jnp.float32,
                                     -bound_o, bound_o),
        })
        in_dim = hidden_layer_width
    layer_weights = jnp.full((n_hidden_layers,), 1.0 / n_hidden_layers, jnp.float32)
    return params, layer_weights


def hedge_vampnet_forward(x_list, params, layer_weights, *, output_softmax=False):
    """forward([x_0, x_tau]) -> (list_of_outputs_x0, list_of_outputs_xtau)."""
    x_0, x_tau = x_list[0], x_list[1]
    b0 = x_0.shape[0]
    output_dim = params[0]["wo"].shape[1]
    n_layers = len(params)
    # Fuse both lobe applications into a single pallas_call (weights DMA'd once).
    x_cat = jnp.concatenate([x_0, x_tau], axis=0)
    slab, _ = hedge_lobe_pallas(x_cat, params, layer_weights,
                                output_softmax=output_softmax,
                                want_per_layer=True, want_combined=False)
    x_0_outputs = [slab[:b0, l * output_dim:(l + 1) * output_dim]
                   for l in range(n_layers)]
    x_tau_outputs = [slab[b0:, l * output_dim:(l + 1) * output_dim]
                     for l in range(n_layers)]
    return x_0_outputs, x_tau_outputs


def hedge_vampnet_transform(x, params, layer_weights, *, output_softmax=False):
    """HedgeVAMPNetModel._transform_impl: hedge-weighted sum of per-layer outputs
    (weighted sum is fused inside the kernel; only the combined result is written)."""
    _, combined = hedge_lobe_pallas(x, params, layer_weights,
                                    output_softmax=output_softmax,
                                    want_per_layer=False, want_combined=True)
    return combined


# ----------------------------------------------------------------------------
# Pure-JAX reference mirroring the kernel's dtype pipeline (bf16 MXU, f32 acc).
# ----------------------------------------------------------------------------
def lobe_ref(x, params, layer_weights, *, output_softmax,
             compute_dtype=jnp.bfloat16):
    outs = []
    h = x.astype(jnp.float32)
    for p in params:
        h = jnp.dot(h.astype(compute_dtype), p["wh"].astype(compute_dtype),
                    preferred_element_type=jnp.float32) + p["bh"]
        h = jnp.where(h > 0.0, h, jnp.exp(jnp.minimum(h, 0.0)) - 1.0)
        o = jnp.dot(h.astype(compute_dtype), p["wo"].astype(compute_dtype),
                    preferred_element_type=jnp.float32) + p["bo"]
        if output_softmax:
            o = jax.nn.softmax(o, axis=-1)
        outs.append(o)
    combined = jnp.sum(layer_weights[:, None, None] * jnp.stack(outs), axis=0)
    return outs, combined


if __name__ == "__main__":
    # Small shapes consistent with the module.
    batch = 8
    input_dim = 16
    output_dim = 4
    n_hidden_layers = 2
    hidden_layer_width = 32

    key = jax.random.PRNGKey(0)
    key, kp, k0, kt = jax.random.split(key, 4)

    params, layer_weights = init_hedge_vampnet_params(
        kp, input_dim, output_dim, n_hidden_layers, hidden_layer_width)

    x_0 = jax.random.normal(k0, (batch, input_dim), jnp.float32)
    x_tau = jax.random.normal(kt, (batch, input_dim), jnp.float32)

    for output_softmax in (False, True):
        fwd = jax.jit(functools.partial(hedge_vampnet_forward,
                                        output_softmax=output_softmax))
        x0_outs, xtau_outs = fwd([x_0, x_tau], params, layer_weights)
        jax.block_until_ready((x0_outs, xtau_outs))

        tfm = jax.jit(functools.partial(hedge_vampnet_transform,
                                        output_softmax=output_softmax))
        combined = tfm(x_0, params, layer_weights)
        jax.block_until_ready(combined)

        # Correctness check against the dtype-mirrored pure-JAX reference.
        ref0, ref0_comb = lobe_ref(x_0, params, layer_weights,
                                   output_softmax=output_softmax)
        reft, _ = lobe_ref(x_tau, params, layer_weights,
                           output_softmax=output_softmax)
        for got, want in zip(x0_outs + xtau_outs, ref0 + reft):
            assert got.shape == want.shape
            assert jnp.allclose(got, want, atol=5e-3, rtol=5e-3), \
                f"forward mismatch vs reference (softmax={output_softmax})"
        assert combined.shape == ref0_comb.shape
        assert jnp.allclose(combined, ref0_comb, atol=5e-3, rtol=5e-3), \
            f"transform mismatch vs reference (softmax={output_softmax})"

    print("KERNEL_OK")
</pallas_src>

<mosaic_0001>
module attributes {stable_mosaic.version = 11 : i64} {
  func.func @kernel(%arg0: i32, %arg1: memref<2xf32, #tpu.memory_space<smem>>, %arg2: memref<16x16xf32, #tpu.memory_space<vmem>>, %arg3: memref<16x32xbf16, #tpu.memory_space<vmem>>, %arg4: memref<1x32xf32, #tpu.memory_space<vmem>>, %arg5: memref<32x4xbf16, #tpu.memory_space<vmem>>, %arg6: memref<1x4xf32, #tpu.memory_space<vmem>>, %arg7: memref<32x32xbf16, #tpu.memory_space<vmem>>, %arg8: memref<1x32xf32, #tpu.memory_space<vmem>>, %arg9: memref<32x4xbf16, #tpu.memory_space<vmem>>, %arg10: memref<1x4xf32, #tpu.memory_space<vmem>>, %arg11: memref<16x8xf32, #tpu.memory_space<vmem>>) attributes {dimension_semantics = [#tpu.dimension_semantics<parallel>], iteration_bounds = array<i64: 1>, scalar_prefetch = 0 : i64, scratch_operands = 0 : i64, tpu.core_type = #tpu.core_type<tc>, window_params = [{transform_indices = @transform_0, window_bounds = array<i64: 2>}, {transform_indices = @transform_1, window_bounds = array<i64: 16, 16>}, {pipeline_mode = #tpu.pipeline_mode<synchronous>, transform_indices = @transform_2, window_bounds = array<i64: 16, 32>}, {pipeline_mode = #tpu.pipeline_mode<synchronous>, transform_indices = @transform_3, window_bounds = array<i64: 1, 32>}, {pipeline_mode = #tpu.pipeline_mode<synchronous>, transform_indices = @transform_4, window_bounds = array<i64: 32, 4>}, {pipeline_mode = #tpu.pipeline_mode<synchronous>, transform_indices = @transform_5, window_bounds = array<i64: 1, 4>}, {pipeline_mode = #tpu.pipeline_mode<synchronous>, transform_indices = @transform_6, window_bounds = array<i64: 32, 32>}, {pipeline_mode = #tpu.pipeline_mode<synchronous>, transform_indices = @transform_7, window_bounds = array<i64: 1, 32>}, {pipeline_mode = #tpu.pipeline_mode<synchronous>, transform_indices = @transform_8, window_bounds = array<i64: 32, 4>}, {pipeline_mode = #tpu.pipeline_mode<synchronous>, transform_indices = @transform_9, window_bounds = array<i64: 1, 4>}, {transform_indices = @transform_10, window_bounds = array<i64: 16, 8>}]} {
    %c0 = arith.constant 0 : index
    %c0_0 = arith.constant 0 : index
    %0 = vector.load %arg2[%c0, %c0_0] : memref<16x16xf32, #tpu.memory_space<vmem>>, vector<16x16xf32>
    %1 = arith.truncf %0 : vector<16x16xf32> to vector<16x16xbf16>
    %c0_1 = arith.constant 0 : index
    %c0_2 = arith.constant 0 : index
    %2 = vector.load %arg3[%c0_1, %c0_2] : memref<16x32xbf16, #tpu.memory_space<vmem>>, vector<16x32xbf16>
    %cst = arith.constant dense<0.000000e+00> : vector<16x32xf32>
    %3 = tpu.matmul %1, %2, %cst {dimension_numbers = #tpu.dot_dimension_numbers<[1], [0], [0], [1], [0, 0, 1, 1], [], []>} : vector<16x16xbf16>, vector<16x32xbf16>, vector<16x32xf32> -> vector<16x32xf32>
    %c0_3 = arith.constant 0 : index
    %c0_4 = arith.constant 0 : index
    %4 = vector.load %arg4[%c0_3, %c0_4] : memref<1x32xf32, #tpu.memory_space<vmem>>, vector<1x32xf32>
    %5 = vector.broadcast %4 : vector<1x32xf32> to vector<16x32xf32>
    %6 = arith.addf %3, %5 : vector<16x32xf32>
    %cst_5 = arith.constant 0.000000e+00 : f32
    %7 = vector.broadcast %cst_5 : f32 to vector<16x32xf32>
    %8 = arith.cmpf ogt, %6, %7 : vector<16x32xf32>
    %cst_6 = arith.constant 0.000000e+00 : f32
    %9 = vector.broadcast %cst_6 : f32 to vector<16x32xf32>
    %10 = arith.minimumf %6, %9 : vector<16x32xf32>
    %11 = math.exp %10 : vector<16x32xf32>
    %cst_7 = arith.constant 1.000000e+00 : f32
    %12 = vector.broadcast %cst_7 : f32 to vector<16x32xf32>
    %13 = arith.subf %11, %12 : vector<16x32xf32>
    %14 = arith.select %8, %6, %13 : vector<16x32xi1>, vector<16x32xf32>
    %15 = arith.truncf %14 : vector<16x32xf32> to vector<16x32xbf16>
    %c0_8 = arith.constant 0 : index
    %c0_9 = arith.constant 0 : index
    %16 = vector.load %arg5[%c0_8, %c0_9] : memref<32x4xbf16, #tpu.memory_space<vmem>>, vector<32x4xbf16>
    %cst_10 = arith.constant dense<0.000000e+00> : vector<16x4xf32>
    %17 = tpu.matmul %15, %16, %cst_10 {dimension_numbers = #tpu.dot_dimension_numbers<[1], [0], [0], [1], [0, 0, 1, 1], [], []>} : vector<16x32xbf16>, vector<32x4xbf16>, vector<16x4xf32> -> vector<16x4xf32>
    %c0_11 = arith.constant 0 : index
    %c0_12 = arith.constant 0 : index
    %18 = vector.load %arg6[%c0_11, %c0_12] : memref<1x4xf32, #tpu.memory_space<vmem>>, vector<1x4xf32>
    %19 = vector.broadcast %18 : vector<1x4xf32> to vector<16x4xf32>
    %20 = arith.addf %17, %19 : vector<16x4xf32>
    %21 = arith.truncf %14 : vector<16x32xf32> to vector<16x32xbf16>
    %c0_13 = arith.constant 0 : index
    %c0_14 = arith.constant 0 : index
    %22 = vector.load %arg7[%c0_13, %c0_14] : memref<32x32xbf16, #tpu.memory_space<vmem>>, vector<32x32xbf16>
    %cst_15 = arith.constant dense<0.000000e+00> : vector<16x32xf32>
    %23 = tpu.matmul %21, %22, %cst_15 {dimension_numbers = #tpu.dot_dimension_numbers<[1], [0], [0], [1], [0, 0, 1, 1], [], []>} : vector<16x32xbf16>, vector<32x32xbf16>, vector<16x32xf32> -> vector<16x32xf32>
    %c0_16 = arith.constant 0 : index
    %c0_17 = arith.constant 0 : index
    %24 = vector.load %arg8[%c0_16, %c0_17] : memref<1x32xf32, #tpu.memory_space<vmem>>, vector<1x32xf32>
    %25 = vector.broadcast %24 : vector<1x32xf32> to vector<16x32xf32>
    %26 = arith.addf %23, %25 : vector<16x32xf32>
    %cst_18 = arith.constant 0.000000e+00 : f32
    %27 = vector.broadcast %cst_18 : f32 to vector<16x32xf32>
    %28 = arith.cmpf ogt, %26, %27 : vector<16x32xf32>
    %cst_19 = arith.constant 0.000000e+00 : f32
    %29 = vector.broadcast %cst_19 : f32 to vector<16x32xf32>
    %30 = arith.minimumf %26, %29 : vector<16x32xf32>
    %31 = math.exp %30 : vector<16x32xf32>
    %cst_20 = arith.constant 1.000000e+00 : f32
    %32 = vector.broadcast %cst_20 : f32 to vector<16x32xf32>
    %33 = arith.subf %31, %32 : vector<16x32xf32>
    %34 = arith.select %28, %26, %33 : vector<16x32xi1>, vector<16x32xf32>
    %35 = arith.truncf %34 : vector<16x32xf32> to vector<16x32xbf16>
    %c0_21 = arith.constant 0 : index
    %c0_22 = arith.constant 0 : index
    %36 = vector.load %arg9[%c0_21, %c0_22] : memref<32x4xbf16, #tpu.memory_space<vmem>>, vector<32x4xbf16>
    %cst_23 = arith.constant dense<0.000000e+00> : vector<16x4xf32>
    %37 = tpu.matmul %35, %36, %cst_23 {dimension_numbers = #tpu.dot_dimension_numbers<[1], [0], [0], [1], [0, 0, 1, 1], [], []>} : vector<16x32xbf16>, vector<32x4xbf16>, vector<16x4xf32> -> vector<16x4xf32>
    %c0_24 = arith.constant 0 : index
    %c0_25 = arith.constant 0 : index
    %38 = vector.load %arg10[%c0_24, %c0_25] : memref<1x4xf32, #tpu.memory_space<vmem>>, vector<1x4xf32>
    %39 = vector.broadcast %38 : vector<1x4xf32> to vector<16x4xf32>
    %40 = arith.addf %37, %39 : vector<16x4xf32>
    %41 = tpu.concatenate %20, %40 in 1 : vector<16x4xf32>, vector<16x4xf32> -> vector<16x8xf32>
    %c0_26 = arith.constant 0 : index
    %c0_27 = arith.constant 0 : index
    %42 = vector.load %arg11[%c0_26, %c0_27] : memref<16x8xf32, #tpu.memory_space<vmem>>, vector<16x8xf32>
    tpu.vector_store %arg11[%c0_26, %c0_27], %41 {strides = array<i32>} : memref<16x8xf32, #tpu.memory_space<vmem>>, vector<16x8xf32>,
    return
  }
  func.func @transform_0(%arg0: i32) -> i32 {
    %c0_i32 = arith.constant 0 : i32
    %c0_i32_0 = arith.constant 0 : i32
    return %c0_i32 : i32
  }
  func.func @transform_1(%arg0: i32) -> (i32, i32) {
    %c0_i32 = arith.constant 0 : i32
    %c0_i32_0 = arith.constant 0 : i32
    return %arg0, %c0_i32 : i32, i32
  }
  func.func @transform_2(%arg0: i32) -> (i32, i32) {
    %c0_i32 = arith.constant 0 : i32
    %c0_i32_0 = arith.constant 0 : i32
    %c0_i32_1 = arith.constant 0 : i32
    return %c0_i32, %c0_i32_0 : i32, i32
  }
  func.func @transform_3(%arg0: i32) -> (i32, i32) {
    %c0_i32 = arith.constant 0 : i32
    %c0_i32_0 = arith.constant 0 : i32
    %c0_i32_1 = arith.constant 0 : i32
    return %c0_i32, %c0_i32_0 : i32, i32
  }
  func.func @transform_4(%arg0: i32) -> (i32, i32) {
    %c0_i32 = arith.constant 0 : i32
    %c0_i32_0 = arith.constant 0 : i32
    %c0_i32_1 = arith.constant 0 : i32
    return %c0_i32, %c0_i32_0 : i32, i32
  }
  func.func @transform_5(%arg0: i32) -> (i32, i32) {
    %c0_i32 = arith.constant 0 : i32
    %c0_i32_0 = arith.constant 0 : i32
    %c0_i32_1 = arith.constant 0 : i32
    return %c0_i32, %c0_i32_0 : i32, i32
  }
  func.func @transform_6(%arg0: i32) -> (i32, i32) {
    %c0_i32 = arith.constant 0 : i32
    %c0_i32_0 = arith.constant 0 : i32
    %c0_i32_1 = arith.constant 0 : i32
    return %c0_i32, %c0_i32_0 : i32, i32
  }
  func.func @transform_7(%arg0: i32) -> (i32, i32) {
    %c0_i32 = arith.constant 0 : i32
    %c0_i32_0 = arith.constant 0 : i32
    %c0_i32_1 = arith.constant 0 : i32
    return %c0_i32, %c0_i32_0 : i32, i32
  }
  func.func @transform_8(%arg0: i32) -> (i32, i32) {
    %c0_i32 = arith.constant 0 : i32
    %c0_i32_0 = arith.constant 0 : i32
    %c0_i32_1 = arith.constant 0 : i32
    return %c0_i32, %c0_i32_0 : i32, i32
  }
  func.func @transform_9(%arg0: i32) -> (i32, i32) {
    %c0_i32 = arith.constant 0 : i32
    %c0_i32_0 = arith.constant 0 : i32
    %c0_i32_1 = arith.constant 0 : i32
    return %c0_i32, %c0_i32_0 : i32, i32
  }
  func.func @transform_10(%arg0: i32) -> (i32, i32) {
    %c0_i32 = arith.constant 0 : i32
    %c0_i32_0 = arith.constant 0 : i32
    return %arg0, %c0_i32 : i32, i32
  }
}

</mosaic_0001>

<bundles_post_ra>
// kernel: hedge_vampnet_forward.1
= control target key start
LH: loop header
LB: loop body
LE: loop exit
PB: predicated region body
PF: predicated region fallthrough
CT: control target
= control target key end

     0   :  { %15 = vsyncpa [#allocation3], 0  ;;  %s563_s0 = inlined_call_operand.vmem [shape: f32[2], index: 0, kind: input, shape index: {}]   ;;  %s564_s1 = inlined_call_operand.vmem [shape: f32[16,16], index: 1, kind: input, shape index: {}]   ;;  %s565_s2 = inlined_call_operand.vmem [shape: bf16[16,32], index: 2, kind: input, shape index: {}]   ;;  %s566_s3 = inlined_call_operand.vmem [shape: f32[1,32], index: 3, kind: input, shape index: {}]   ;;  %s567_s4 = inlined_call_operand.vmem [shape: bf16[32,4], index: 4, kind: input, shape index: {}]   ;;  %s568_s5 = inlined_call_operand.vmem [shape: f32[1,4], index: 5, kind: input, shape index: {}]   ;;  %s569_s6 = inlined_call_operand.vmem [shape: bf16[32,32], index: 6, kind: input, shape index: {}]   ;;  %s570_s7 = inlined_call_operand.vmem [shape: f32[1,32], index: 7, kind: input, shape index: {}]   ;;  %s571_s8 = inlined_call_operand.vmem [shape: bf16[32,4], index: 8, kind: input, shape index: {}]   ;;  %s572_s9 = inlined_call_operand.vmem [shape: f32[1,4], index: 9, kind: input, shape index: {}]   ;;  %s573_s10 = inlined_call_operand.vmem [shape: f32[16,8], index: 10, kind: output, shape index: {}]  }
   0x1   :  { %s22_s15 = sshll.u32 %s563_s0, 4  ;;  %s23_s15 = int_to_ptr.vmem [resolvable:$true] %s22_s15 }
   0x2   :  { %s435_s16 = scalar_lea.vmem %s23_s15, 16  ;;  %p440_p1 = scmp.lt.s32.totalorder %s23_s15, %s23_s15 }
   0x3   :  { %p436_p0 = scmp.ne.s32.totalorder %s23_s15, %s435_s16  ;;  %p441_p2 = scmp.lt.s32.totalorder %s435_s16, %s435_s16 }
   0x5   :  { %p442_p3 = por %p441_p2, %p440_p1 }
   0x7   :  { %p443_p4 = pnand %p442_p3, %p436_p0 }
   0x9   :  { %446 = shalt.err (!%p443_p4)
}
   0xa   :  { %s449_s17 = smov [#allocation2]  }
   0xb   :  { %25 = dma.vmem_to_smem %s23_s15, 16, %s449_s17, [#allocation3]  }
   0xc   :  { %447 = dma.done.wait [#allocation3], 16  }
   0xd   :  { %448 = vsyncadd [#allocation3], 4294967280 }
   0xe   :  { %47 = sfence }
   0xf   :  { %v420_v0 = vld [vmem:[%s565_s2] sm:$0xff]   ;;  %v450_v1 = vmov 0.0   ;;  %v50_v3 = vld [vmem:[%s564_s1 + $0x8] sm:$0xff]  ;;  %vm67_vm0 = vcmask 130048   ;;  %vm451_vm1 = vmmov 0   ;;  %vm148_vm4 = vcmask 261120  }
  0x10   :  { %386 = vmatprep.subr.bf16.mxu0 %v450_v1  ;;  %v49_v2 = vld [vmem:[%s564_s1] sm:$0xff]  ;;  %392 = vmatprep.subr.bf16.mxu1 %v450_v1  ;;  %v423_v7 = vld [vmem:[%s569_s6 + $0x8] sm:$0xff]   ;;  %s452_s14 = smov 4   ;;  %vm345_vm7 = vcmask 31744   ;;  %vm348_vm8 = vcmask 64512  }
  0x11   :  { %387 = vmatpush3.bf16.msra.mxu0 %v420_v0  ;;  %388 = vmatprep.mubr.msk.bf16.mxu0 %vm451_vm1, %v450_v1  ;;  %v51_v4 = vpack.c.bf16 %v50_v3, %v49_v2  ;;  %v421_v5 = vld [vmem:[%s569_s6] sm:$0xff]   ;;  %v424_v8 = vld [vmem:[%s567_s4 + $0x8] sm:$0xff]  }
  0x12   :  { %400 = vmatprep.subr.bf16.mxu0 %v450_v1  ;;  %396 = vmatprep.mubr.msk.bf16.mxu1 %vm451_vm1, %v450_v1  ;;  %v422_v6 = vld [vmem:[%s567_s4] sm:$0xff]   ;;  %v426_v28 = vld [vmem:[%s571_s8 + $0x8] sm:$0xff]  }
  0x13   :  { %393 = vmatpush3.bf16.msra.mxu1 %v422_v6  ;;  %v356_v9 = vld [vmem:[%s566_s3] ss:$0 sm:$0xff] }
  0x14   :  { %389 = vmatmul.mubr.msk.bf16.vlgmr.msra.gmra.mrb[0].mxu0 %vm67_vm0, %v51_v4  ;;  %394 = vmatprep.subr.bf16.mxu1 %v450_v1  ;;  %v425_v27 = vld [vmem:[%s571_s8] sm:$0xff]  }
  0x15   :  { %404 = vmatprep.mubr.msk.bf16.mxu0 %vm451_vm1, %v450_v1  ;;  %401 = vmatpush3.bf16.msra.mxu0 %v421_v5  ;;  %v365_v29 = vld [vmem:[%s570_s7] ss:$0 sm:$0xff] }
  0x16   :  { %402 = vmatprep.subr.bf16.mxu0 %v450_v1  ;;  %v371_v51 = vld [vmem:[%s572_s9] ss:$0 sm:$0xff] }
  0x17   :  { %395 = vmatpush3.bf16.msra.mxu1 %v424_v8  ;;  %v361_v58 = vld [vmem:[%s568_s5] ss:$0 sm:$0xff] }
  0x18   :  { %408 = vmatprep.subr.bf16.mxu1 %v450_v1 }
  0x19   :  { %403 = vmatpush3.bf16.msra.mxu0 %v423_v7 }
  0xe7   :  { %v105_v10 = vpop.f32.mrb[0].mxu0 }
  0xe8   :  { %v106_v11 = vadd.f32 %v356_v9, %v105_v10  ;;  %v390_v12 = vpop.f32.mrb[1].mxu0 }
  0xe9   :  { %v108_v13 = vpop.f32.mrb[2].mxu0 }
  0xea   :  { %v114_v14 = vmin.f32 %v106_v11, 0.0  ;;  %v109_v15 = vadd.f32 %v356_v9, %v108_v13  ;;  %v391_v16 = vpop.f32.mrb[3].mxu0  ;;  %vm112_vm2 = vcmp.gt.f32.partialorder %v106_v11, 0.0 }
  0xec   :  { %v116_v17 = vmul.f32 1.442695, %v114_v14  ;;  %v115_v18 = vmin.f32 %v109_v15, 0.0  ;;  %vm113_vm3 = vcmp.gt.f32.partialorder %v109_v15, 0.0 }
  0xee   :  { %427 = vpow2.f32 %v116_v17  ;;  %v118_v19 = vmul.f32 1.442695, %v115_v18 }
  0xf0   :  { %429 = vpow2.f32 %v118_v19 }
  0xf8   :  { %v428_v20 = vpop.eup %427 }
  0xf9   :  { %v359_v21 = vadd.f32 -1.0, %v428_v20 }
  0xfa   :  { %v430_v22 = vpop.eup %429 }
  0xfb   :  { %v360_v23 = vadd.f32 -1.0, %v430_v22  ;;  %v122_v24 = vsel %vm112_vm2, %v106_v11, %v359_v21 }
  0xfd   :  { %v123_v25 = vsel %vm113_vm3, %v109_v15, %v360_v23 }
  0xfe   :  { %v124_v26 = vpack.c.bf16 %v123_v25, %v122_v24 }
 0x100   :  { %397 = vmatmul.mubr.msk.bf16.vlgmr.msra.gmra.mrb[0].mxu1 %vm148_vm4, %v124_v26  ;;  %405 = vmatmul.mubr.msk.bf16.vlgmr.msra.gmra.mrb[4].mxu0 %vm148_vm4, %v124_v26 }
 0x101   :  { %412 = vmatprep.mubr.msk.bf16.mxu1 %vm451_vm1, %v450_v1  ;;  %409 = vmatpush3.bf16.msra.mxu1 %v425_v27 }
 0x102   :  { %410 = vmatprep.subr.bf16.mxu1 %v450_v1 }
 0x105   :  { %411 = vmatpush3.bf16.msra.mxu1 %v426_v28 }
 0x1d3   :  { %v186_v30 = vpop.f32.mrb[0].mxu1  ;;  %v250_v31 = vpop.f32.mrb[4].mxu0 }
 0x1d4   :  { %v251_v32 = vadd.f32 %v365_v29, %v250_v31  ;;  %v398_v33 = vpop.f32.mrb[1].mxu1  ;;  %v406_v34 = vpop.f32.mrb[5].mxu0  ;;  %v187_v59 = vadd.f32 %v361_v58, %v186_v30 }
 0x1d5   :  { %v189_v35 = vpop.f32.mrb[2].mxu1  ;;  %v253_v36 = vpop.f32.mrb[6].mxu0 }
 0x1d6   :  { %v259_v37 = vmin.f32 %v251_v32, 0.0  ;;  %v254_v38 = vadd.f32 %v365_v29, %v253_v36  ;;  %v399_v39 = vpop.f32.mrb[3].mxu1  ;;  %v407_v40 = vpop.f32.mrb[7].mxu0  ;;  %vm257_vm5 = vcmp.gt.f32.partialorder %v251_v32, 0.0  ;;  %v190_v62 = vadd.f32 %v361_v58, %v189_v35 }
 0x1d8   :  { %v261_v41 = vmul.f32 1.442695, %v259_v37  ;;  %v260_v42 = vmin.f32 %v254_v38, 0.0  ;;  %vm258_vm6 = vcmp.gt.f32.partialorder %v254_v38, 0.0 }
 0x1da   :  { %431 = vpow2.f32 %v261_v41  ;;  %v263_v43 = vmul.f32 1.442695, %v260_v42 }
 0x1dc   :  { %433 = vpow2.f32 %v263_v43 }
 0x1e4   :  { %v432_v44 = vpop.eup %431 }
 0x1e5   :  { %v369_v45 = vadd.f32 -1.0, %v432_v44 }
 0x1e6   :  { %v434_v46 = vpop.eup %433 }
 0x1e7   :  { %v370_v47 = vadd.f32 -1.0, %v434_v46  ;;  %v267_v48 = vsel %vm257_vm5, %v251_v32, %v369_v45 }
 0x1e9   :  { %v268_v49 = vsel %vm258_vm6, %v254_v38, %v370_v47 }
 0x1ea   :  { %v269_v50 = vpack.c.bf16 %v268_v49, %v267_v48 }
 0x1ec   :  { %413 = vmatmul.mubr.msk.bf16.vlgmr.msra.gmra.mrb[4].mxu1 %vm148_vm4, %v269_v50 }
 0x2bf   :  { %v330_v52 = vpop.f32.mrb[4].mxu1 }
 0x2c0   :  { %v331_v53 = vadd.f32 %v371_v51, %v330_v52  ;;  %v414_v54 = vpop.f32.mrb[5].mxu1 }
 0x2c1   :  { %v333_v55 = vpop.f32.mrb[6].mxu1 }
 0x2c2   :  { %339 = vrot.lane.b32.xlu0 %v331_v53, %s452_s14  ;;  %v415_v56 = vpop.f32.mrb[7].mxu1  ;;  %v334_v57 = vadd.f32 %v371_v51, %v333_v55 }
 0x2c6   :  { %341 = vrot.lane.b32.xlu0 %v334_v57, %s452_s14 }
 0x334   :  { %v340_v60 = vpop.permute.xlu0 %339 }
 0x335   :  { %v346_v61 = vsel %vm345_vm7, %v187_v59, %v340_v60 }
 0x336   :  { %349 = vst.msk [vmem:[%s573_s10] sm:$0xff] %vm348_vm8, %v346_v61 }
 0x338   :  { %v342_v63 = vpop.permute.xlu0 %341 }
 0x339   :  { %v347_v0 = vsel %vm345_vm7, %v190_v62, %v342_v63 }
 0x33a   :  { %350 = vst.msk [vmem:[%s573_s10 + $0x8] sm:$0xff] %vm348_vm8, %v347_v0 }
 0x33b   :  { %355 = vsyncpa [#allocation3], 1 }

</bundles_post_ra>
